<compile_context>
chip_gen: v6e
topology: v6e:2x2x1
jax: 0.10.0
libtpu: 0.0.40
codegen_flags: <defaults>
</compile_context>

<pallas_src>
import functools

import jax
import jax.numpy as jnp
from jax.experimental import pallas as pl
from jax.experimental.pallas import tpu as pltpu


def _round_up(x, m):
    return ((x + m - 1) // m) * m


def _default_num_cores():
    """TensorCores per chip: 2 on v7x, 1 on v5e/v6e. Fail-safe to 1."""
    try:
        kind = jax.devices()[0].device_kind.lower()
    except Exception:  # pragma: no cover - defensive
        return 1
    return 2 if ("v7" in kind or "7x" in kind) else 1


def _mlp_kernel(num_layers, d_in, d_out, *refs):
    """MLP tile: h = tanh(h @ W_i + b_i) for hidden layers, linear last layer.

    refs layout (inputs, outputs, scratch):
      refs[0]                     : x_ref    [bm, d_in]        f32
      refs[1 : 1+L]               : w_i      [pad_i, pad_{i+1}] (bf16 or f32)
      refs[1+L : 1+2L]            : b_i      [1, pad_{i+1}]     f32
      refs[1+2L]                  : o_ref    [bm, d_out]        f32
      refs[2+2L]                  : pad_ref  [bm, pad_0]        f32 scratch
    """
    x_ref = refs[0]
    w_refs = refs[1:1 + num_layers]
    b_refs = refs[1 + num_layers:1 + 2 * num_layers]
    o_ref = refs[1 + 2 * num_layers]
    pad_ref = refs[2 + 2 * num_layers]

    # Lane-pad the narrow input tile to the first layer's padded width inside
    # VMEM (avoids writing/re-reading an 8x-inflated copy through HBM).
    pad_ref[...] = jnp.zeros_like(pad_ref)
    pad_ref[:, :d_in] = x_ref[...]
    h = pad_ref[...]

    for li in range(num_layers):  # L is small; static unroll is fine.
        w = w_refs[li][...]
        b = b_refs[li][...]
        h = jnp.dot(h.astype(w.dtype), w,
                    preferred_element_type=jnp.float32) + b
        if li < num_layers - 1:
            h = jnp.tanh(h)  # f32 on the EUP slot (correct for v5e too)

    # Store only the real output lanes (16x fewer HBM bytes than a 128-wide
    # padded slab for d_out=8, and no wrapper-side slice pass).
    o_ref[...] = h[:, :d_out].astype(o_ref.dtype)


def pack_params(params, normalized=False, weight_dtype=jnp.bfloat16):
    """Fold normalization into layers 0 / L-1, pad per-layer to 128 multiples.

    Folding (only when normalized=False, matching module semantics):
      W0' = W0 / inp_stds[:, None]
      b0' = b0 - (inp_means / inp_stds) @ W0
      WL' = WL * out_stds[None, :]
      bL' = bL * out_stds + out_means
    Biases stay f32. When weight_dtype is narrower than f32 and the input-std
    scale was folded into W0, layer 0 stays f32 (the fold widens its range).
    """
    weights = [jnp.asarray(w, jnp.float32) for w in params["weights"]]
    biases = [jnp.asarray(b, jnp.float32).reshape(-1) for b in params["biases"]]
    num_layers = len(weights)
    w_dtypes = [weight_dtype] * num_layers

    if not normalized:
        inp_m = jnp.asarray(params["inp_means"], jnp.float32).reshape(-1)
        inp_s = jnp.asarray(params["inp_stds"], jnp.float32).reshape(-1)
        out_m = jnp.asarray(params["out_means"], jnp.float32).reshape(-1)
        out_s = jnp.asarray(params["out_stds"], jnp.float32).reshape(-1)
        w0 = weights[0]
        biases[0] = biases[0] - (inp_m / inp_s) @ w0
        weights[0] = w0 / inp_s[:, None]
        weights[-1] = weights[-1] * out_s[None, :]
        biases[-1] = biases[-1] * out_s + out_m
        if weight_dtype != jnp.float32:
            w_dtypes[0] = jnp.float32  # protect folded 1/std scale

    dims = [weights[0].shape[0]] + [w.shape[1] for w in weights]
    pads = [_round_up(d, 128) for d in dims]  # per-layer padding

    w_pads, b_pads = [], []
    for i, (w, b) in enumerate(zip(weights, biases)):
        wp = jnp.zeros((pads[i], pads[i + 1]), jnp.float32)
        wp = wp.at[: w.shape[0], : w.shape[1]].set(w).astype(w_dtypes[i])
        bp = jnp.zeros((1, pads[i + 1]), jnp.float32).at[0, : b.shape[0]].set(b)
        w_pads.append(wp)
        b_pads.append(bp)

    return {
        "w_pads": w_pads,
        "b_pads": b_pads,
        "dims_pad": pads,
        "d_in": dims[0],
        "d_out": dims[-1],
        "num_layers": num_layers,
    }


def residual_env_model_forward(x, packed, *, block_batch=None):
    """Forward pass of the (pre-folded) ResidualEnvModel as one Pallas call.

    x      : [batch, d_in] f32
    packed : output of pack_params(...)
    block_batch : optional batch-tile override; by default chosen per
                  generation (one tile per TensorCore for small batches,
                  <=512 rows per tile for large batches).
    """
    num_layers = packed["num_layers"]
    d_in, d_out = packed["d_in"], packed["d_out"]
    pads = packed["dims_pad"]
    w_pads, b_pads = packed["w_pads"], packed["b_pads"]
    batch = x.shape[0]

    num_cores = _default_num_cores()
    if block_batch is None:
        bm = _round_up((batch + num_cores - 1) // num_cores, 8)
        bm = max(8, min(bm, 512))
    else:
        bm = max(8, _round_up(min(block_batch, max(batch, 1)), 8))
    batch_p = _round_up(batch, bm)
    grid = (batch_p // bm,)

    x32 = x.astype(jnp.float32)
    if batch_p != batch:
        # Batch-only padding at the real (narrow) feature width — cheap.
        x32 = jnp.pad(x32, ((0, batch_p - batch), (0, 0)))

    # Activation tile marches over batch; parameters use constant index_maps
    # so they stay resident in VMEM across grid steps.
    in_specs = [pl.BlockSpec((bm, d_in), lambda i: (i, 0))]
    for w in w_pads:
        in_specs.append(pl.BlockSpec(w.shape, lambda i: (0, 0)))
    for b in b_pads:
        in_specs.append(pl.BlockSpec(b.shape, lambda i: (0, 0)))

    # Rough VMEM budget: params (double-buffered by default) + activation
    # tiles + I/O tiles; floor at 32 MiB (raises v5e's 16 MiB scoped default),
    # cap at 64 MiB (v7x physical).
    param_bytes = sum(w.size * w.dtype.itemsize for w in w_pads)
    param_bytes += sum(b.size * b.dtype.itemsize for b in b_pads)
    io_bytes = bm * (d_in + d_out) * 4
    act_bytes = bm * max(pads) * 4
    est = 2 * param_bytes + 4 * io_bytes + 4 * act_bytes
    vmem_limit = int(min(max(2 * est, 32 << 20), 64 << 20))

    kernel = functools.partial(_mlp_kernel, num_layers, d_in, d_out)

    out = pl.pallas_call(
        kernel,
        out_shape=jax.ShapeDtypeStruct((batch_p, d_out), jnp.float32),
        grid=grid,
        in_specs=in_specs,
        out_specs=pl.BlockSpec((bm, d_out), lambda i: (i, 0)),
        scratch_shapes=[pltpu.VMEM((bm, pads[0]), jnp.float32)],
        compiler_params=pltpu.CompilerParams(
            dimension_semantics=("parallel",),
            vmem_limit_bytes=vmem_limit),
    )(x32, *w_pads, *b_pads)

    return out[:batch] if batch_p != batch else out


def make_params(arch, key):
    """Deterministically initialize parameters for the given architecture."""
    d_in, d_out = arch[0], arch[-1]
    keys = jax.random.split(key, 2 * (len(arch) - 1) + 4)
    ki = iter(range(len(keys)))

    weights, biases = [], []
    for i in range(1, len(arch)):
        fan_in, fan_out = arch[i - 1], arch[i]
        bound = 1.0 / jnp.sqrt(jnp.float32(fan_in))
        # stored as [in, out] (transposed relative to torch.nn.Linear.weight)
        w = jax.random.uniform(keys[next(ki)], (fan_in, fan_out),
                               jnp.float32, -bound, bound)
        b = jax.random.uniform(keys[next(ki)], (1, fan_out),
                               jnp.float32, -bound, bound)
        weights.append(w)
        biases.append(b)

    inp_means = jax.random.normal(keys[next(ki)], (1, d_in), jnp.float32)
    inp_stds = 0.5 + jax.random.uniform(keys[next(ki)], (1, d_in), jnp.float32)
    out_means = jax.random.normal(keys[next(ki)], (1, d_out), jnp.float32)
    out_stds = 0.5 + jax.random.uniform(keys[next(ki)], (1, d_out), jnp.float32)

    return {
        "weights": weights,
        "biases": biases,
        "inp_means": inp_means,
        "inp_stds": inp_stds,
        "out_means": out_means,
        "out_stds": out_stds,
    }


def reference_forward(x, params, normalized=False):
    """Pure-JAX reference matching the PyTorch module semantics (f32)."""
    h = x
    if not normalized:
        h = (h - params["inp_means"]) / params["inp_stds"]
    n = len(params["weights"])
    for i, (w, b) in enumerate(zip(params["weights"], params["biases"])):
        h = jnp.dot(h, w, precision=jax.lax.Precision.HIGHEST) + b
        if i < n - 1:
            h = jnp.tanh(h)
    if not normalized:
        h = h * params["out_stds"] + params["out_means"]
    return h


if __name__ == "__main__":
    # arch = [input_dim, hidden, hidden, output_dim]
    arch = [16, 32, 32, 8]
    batch = 256

    key = jax.random.PRNGKey(0)
    k_params, k_x = jax.random.split(key)
    params = make_params(arch, k_params)
    x = jax.random.normal(k_x, (batch, arch[0]), jnp.float32)
    ref = reference_forward(x, params, normalized=False)

    # Default path: bf16 weights (MXU-native on all generations), f32
    # accumulate/bias/tanh, layer-0 kept f32 because of the 1/inp_std fold.
    packed = pack_params(params)
    out = jax.block_until_ready(residual_env_model_forward(x, packed))
    assert out.shape == (batch, arch[-1])
    assert jnp.allclose(out, ref, atol=5e-2, rtol=5e-2), (
        f"bf16 max abs err {jnp.max(jnp.abs(out - ref))}")

    # Full-f32 weights: tight tolerance against the reference.
    packed_f32 = pack_params(params, weight_dtype=jnp.float32)
    out_f32 = jax.block_until_ready(residual_env_model_forward(x, packed_f32))
    assert jnp.allclose(out_f32, ref, atol=1e-4, rtol=1e-4), (
        f"f32 max abs err {jnp.max(jnp.abs(out_f32 - ref))}")

    # normalized=True path: no folding, no normalization operands at all.
    packed_n = pack_params(params, normalized=True, weight_dtype=jnp.float32)
    out_n = jax.block_until_ready(residual_env_model_forward(x, packed_n))
    ref_n = reference_forward(x, params, normalized=True)
    assert jnp.allclose(out_n, ref_n, atol=1e-4, rtol=1e-4), (
        f"normalized max abs err {jnp.max(jnp.abs(out_n - ref_n))}")

    # Ragged small batch exercises batch-tile padding (pad rows dropped).
    xs = x[:5]
    out_s = jax.block_until_ready(residual_env_model_forward(xs, packed_f32))
    assert out_s.shape == (5, arch[-1])
    assert jnp.allclose(out_s, ref[:5], atol=1e-4, rtol=1e-4), (
        f"small-batch max abs err {jnp.max(jnp.abs(out_s - ref[:5]))}")

    print("KERNEL_OK")
</pallas_src>

<mosaic_0001>
module attributes {stable_mosaic.version = 11 : i64} {
  func.func @_mlp_kernel(%arg0: i32, %arg1: memref<256x16xf32, #tpu.memory_space<vmem>>, %arg2: memref<128x128xf32, #tpu.memory_space<vmem>>, %arg3: memref<128x128xbf16, #tpu.memory_space<vmem>>, %arg4: memref<128x128xbf16, #tpu.memory_space<vmem>>, %arg5: memref<1x128xf32, #tpu.memory_space<vmem>>, %arg6: memref<1x128xf32, #tpu.memory_space<vmem>>, %arg7: memref<1x128xf32, #tpu.memory_space<vmem>>, %arg8: memref<256x8xf32, #tpu.memory_space<vmem>>, %arg9: memref<256x128xf32, #tpu.memory_space<vmem>>) attributes {dimension_semantics = [#tpu.dimension_semantics<parallel>], iteration_bounds = array<i64: 1>, scalar_prefetch = 0 : i64, scratch_operands = 1 : i64, tpu.core_type = #tpu.core_type<tc>, window_params = [{transform_indices = @transform_0, window_bounds = array<i64: 256, 16>}, {pipeline_mode = #tpu.pipeline_mode<synchronous>, transform_indices = @transform_1, window_bounds = array<i64: 128, 128>}, {pipeline_mode = #tpu.pipeline_mode<synchronous>, transform_indices = @transform_2, window_bounds = array<i64: 128, 128>}, {pipeline_mode = #tpu.pipeline_mode<synchronous>, transform_indices = @transform_3, window_bounds = array<i64: 128, 128>}, {pipeline_mode = #tpu.pipeline_mode<synchronous>, transform_indices = @transform_4, window_bounds = array<i64: 1, 128>}, {pipeline_mode = #tpu.pipeline_mode<synchronous>, transform_indices = @transform_5, window_bounds = array<i64: 1, 128>}, {pipeline_mode = #tpu.pipeline_mode<synchronous>, transform_indices = @transform_6, window_bounds = array<i64: 1, 128>}, {transform_indices = @transform_7, window_bounds = array<i64: 256, 8>}]} {
    %cst = arith.constant 0.000000e+00 : f32
    %0 = vector.broadcast %cst : f32 to vector<256x128xf32>
    %c0 = arith.constant 0 : index
    %c0_0 = arith.constant 0 : index
    %1 = vector.load %arg9[%c0, %c0_0] : memref<256x128xf32, #tpu.memory_space<vmem>>, vector<256x128xf32>
    tpu.vector_store %arg9[%c0, %c0_0], %0 {strides = array<i32>} : memref<256x128xf32, #tpu.memory_space<vmem>>, vector<256x128xf32>,
    %c0_1 = arith.constant 0 : index
    %c0_2 = arith.constant 0 : index
    %2 = vector.load %arg1[%c0_1, %c0_2] : memref<256x16xf32, #tpu.memory_space<vmem>>, vector<256x16xf32>
    %c0_3 = arith.constant 0 : index
    %c0_4 = arith.constant 0 : index
    %3 = vector.load %arg9[%c0_3, %c0_4] : memref<256x128xf32, #tpu.memory_space<vmem>>, vector<256x16xf32>
    tpu.vector_store %arg9[%c0_3, %c0_4], %2 {strides = array<i32>} : memref<256x128xf32, #tpu.memory_space<vmem>>, vector<256x16xf32>,
    %c0_5 = arith.constant 0 : index
    %c0_6 = arith.constant 0 : index
    %4 = vector.load %arg9[%c0_5, %c0_6] : memref<256x128xf32, #tpu.memory_space<vmem>>, vector<256x128xf32>
    %c0_7 = arith.constant 0 : index
    %c0_8 = arith.constant 0 : index
    %5 = vector.load %arg2[%c0_7, %c0_8] : memref<128x128xf32, #tpu.memory_space<vmem>>, vector<128x128xf32>
    %c0_9 = arith.constant 0 : index
    %c0_10 = arith.constant 0 : index
    %6 = vector.load %arg5[%c0_9, %c0_10] : memref<1x128xf32, #tpu.memory_space<vmem>>, vector<1x128xf32>
    %cst_11 = arith.constant dense<0.000000e+00> : vector<256x128xf32>
    %7 = tpu.matmul %4, %5, %cst_11 {dimension_numbers = #tpu.dot_dimension_numbers<[1], [0], [0], [1], [0, 0, 1, 1], [], []>} : vector<256x128xf32>, vector<128x128xf32>, vector<256x128xf32> -> vector<256x128xf32>
    %8 = vector.broadcast %6 : vector<1x128xf32> to vector<256x128xf32>
    %9 = arith.addf %7, %8 : vector<256x128xf32>
    %10 = math.tanh %9 : vector<256x128xf32>
    %c0_12 = arith.constant 0 : index
    %c0_13 = arith.constant 0 : index
    %11 = vector.load %arg3[%c0_12, %c0_13] : memref<128x128xbf16, #tpu.memory_space<vmem>>, vector<128x128xbf16>
    %c0_14 = arith.constant 0 : index
    %c0_15 = arith.constant 0 : index
    %12 = vector.load %arg6[%c0_14, %c0_15] : memref<1x128xf32, #tpu.memory_space<vmem>>, vector<1x128xf32>
    %13 = arith.truncf %10 : vector<256x128xf32> to vector<256x128xbf16>
    %cst_16 = arith.constant dense<0.000000e+00> : vector<256x128xf32>
    %14 = tpu.matmul %13, %11, %cst_16 {dimension_numbers = #tpu.dot_dimension_numbers<[1], [0], [0], [1], [0, 0, 1, 1], [], []>} : vector<256x128xbf16>, vector<128x128xbf16>, vector<256x128xf32> -> vector<256x128xf32>
    %15 = vector.broadcast %12 : vector<1x128xf32> to vector<256x128xf32>
    %16 = arith.addf %14, %15 : vector<256x128xf32>
    %17 = math.tanh %16 : vector<256x128xf32>
    %c0_17 = arith.constant 0 : index
    %c0_18 = arith.constant 0 : index
    %18 = vector.load %arg4[%c0_17, %c0_18] : memref<128x128xbf16, #tpu.memory_space<vmem>>, vector<128x128xbf16>
    %c0_19 = arith.constant 0 : index
    %c0_20 = arith.constant 0 : index
    %19 = vector.load %arg7[%c0_19, %c0_20] : memref<1x128xf32, #tpu.memory_space<vmem>>, vector<1x128xf32>
    %20 = arith.truncf %17 : vector<256x128xf32> to vector<256x128xbf16>
    %cst_21 = arith.constant dense<0.000000e+00> : vector<256x128xf32>
    %21 = tpu.matmul %20, %18, %cst_21 {dimension_numbers = #tpu.dot_dimension_numbers<[1], [0], [0], [1], [0, 0, 1, 1], [], []>} : vector<256x128xbf16>, vector<128x128xbf16>, vector<256x128xf32> -> vector<256x128xf32>
    %22 = vector.broadcast %19 : vector<1x128xf32> to vector<256x128xf32>
    %23 = arith.addf %21, %22 : vector<256x128xf32>
    %24 = vector.extract_strided_slice %23 {offsets = [0, 0], sizes = [256, 8], strides = [1, 1]} : vector<256x128xf32> to vector<256x8xf32>
    %c0_22 = arith.constant 0 : index
    %c0_23 = arith.constant 0 : index
    %25 = vector.load %arg8[%c0_22, %c0_23] : memref<256x8xf32, #tpu.memory_space<vmem>>, vector<256x8xf32>
    tpu.vector_store %arg8[%c0_22, %c0_23], %24 {strides = array<i32>} : memref<256x8xf32, #tpu.memory_space<vmem>>, vector<256x8xf32>,
    return
  }
  func.func @transform_0(%arg0: i32) -> (i32, i32) {
    %c0_i32 = arith.constant 0 : i32
    %c0_i32_0 = arith.constant 0 : i32
    return %arg0, %c0_i32 : i32, i32
  }
  func.func @transform_1(%arg0: i32) -> (i32, i32) {
    %c0_i32 = arith.constant 0 : i32
    %c0_i32_0 = arith.constant 0 : i32
    %c0_i32_1 = arith.constant 0 : i32
    return %c0_i32, %c0_i32_0 : i32, i32
  }
  func.func @transform_2(%arg0: i32) -> (i32, i32) {
    %c0_i32 = arith.constant 0 : i32
    %c0_i32_0 = arith.constant 0 : i32
    %c0_i32_1 = arith.constant 0 : i32
    return %c0_i32, %c0_i32_0 : i32, i32
  }
  func.func @transform_3(%arg0: i32) -> (i32, i32) {
    %c0_i32 = arith.constant 0 : i32
    %c0_i32_0 = arith.constant 0 : i32
    %c0_i32_1 = arith.constant 0 : i32
    return %c0_i32, %c0_i32_0 : i32, i32
  }
  func.func @transform_4(%arg0: i32) -> (i32, i32) {
    %c0_i32 = arith.constant 0 : i32
    %c0_i32_0 = arith.constant 0 : i32
    %c0_i32_1 = arith.constant 0 : i32
    return %c0_i32, %c0_i32_0 : i32, i32
  }
  func.func @transform_5(%arg0: i32) -> (i32, i32) {
    %c0_i32 = arith.constant 0 : i32
    %c0_i32_0 = arith.constant 0 : i32
    %c0_i32_1 = arith.constant 0 : i32
    return %c0_i32, %c0_i32_0 : i32, i32
  }
  func.func @transform_6(%arg0: i32) -> (i32, i32) {
    %c0_i32 = arith.constant 0 : i32
    %c0_i32_0 = arith.constant 0 : i32
    %c0_i32_1 = arith.constant 0 : i32
    return %c0_i32, %c0_i32_0 : i32, i32
  }
  func.func @transform_7(%arg0: i32) -> (i32, i32) {
    %c0_i32 = arith.constant 0 : i32
    %c0_i32_0 = arith.constant 0 : i32
    return %arg0, %c0_i32 : i32, i32
  }
}

</mosaic_0001>

<bundles_post_ra>
// kernel: tpu_custom_call.1
= control target key start
LH: loop header
LB: loop body
LE: loop exit
PB: predicated region body
PF: predicated region fallthrough
CT: control target
= control target key end

     0   :  { %v1469_v2 = vmov 0.0   ;;  %vm91_vm0 = vcmask 130048   ;;  %vm964_vm1 = vcmask 64512   ;;  %s1979_s1 = inlined_call_operand.vmem [shape: f32[128,128], index: 1, kind: input, shape index: {}]   ;;  %s1980_s0 = inlined_call_operand.vmem [shape: f32[256,16], index: 0, kind: input, shape index: {}]   ;;  %s1981_s2 = inlined_call_operand.vmem [shape: bf16[128,128], index: 2, kind: input, shape index: {}]   ;;  %s1982_s3 = inlined_call_operand.vmem [shape: bf16[128,128], index: 3, kind: input, shape index: {}]   ;;  %s1983_s4 = inlined_call_operand.vmem [shape: f32[1,128], index: 4, kind: input, shape index: {}]   ;;  %s1984_s5 = inlined_call_operand.vmem [shape: f32[1,128], index: 5, kind: input, shape index: {}]   ;;  %s1985_s6 = inlined_call_operand.vmem [shape: f32[1,128], index: 6, kind: input, shape index: {}]   ;;  %s1986_s7 = inlined_call_operand.vmem [shape: f32[256,8], index: 7, kind: output, shape index: {}]  }
   0x1   :  { %v171_v0 = vld [vmem:[%s1979_s1 + $0x78] sm:$0xff]  ;;  %v170_v1 = vld [vmem:[%s1979_s1 + $0x70] sm:$0xff]  ;;  %27 = vst [vmem:[#allocation2] sm:$0xff] %v1469_v2  ;;  %28 = vst [vmem:[#allocation2 + $0x8] sm:$0xff] %v1469_v2 }
   0x2   :  { %29 = vst [vmem:[#allocation2 + $0x10] sm:$0xff] %v1469_v2  ;;  %30 = vst [vmem:[#allocation2 + $0x18] sm:$0xff] %v1469_v2  ;;  %1116 = vmatprep.subr.mxu0 %v171_v0  ;;  %1292 = vmatprep.subr.mxu1 %v171_v0  ;;  %v169_v3 = vld [vmem:[%s1979_s1 + $0x68] sm:$0xff]  ;;  %v168_v4 = vld [vmem:[%s1979_s1 + $0x60] sm:$0xff] }
   0x3   :  { %31 = vst [vmem:[#allocation2 + $0x20] sm:$0xff] %v1469_v2  ;;  %32 = vst [vmem:[#allocation2 + $0x28] sm:$0xff] %v1469_v2  ;;  %1117 = vmatpush3.msra.mxu0 %v171_v0  ;;  %1308 = vmatpush3.msra.mxu1 %v171_v0  ;;  %v167_v5 = vld [vmem:[%s1979_s1 + $0x58] sm:$0xff]  ;;  %v59_v6 = vld [vmem:[%s1980_s0] sm:$0xff] }
   0x4   :  { %33 = vst [vmem:[#allocation2 + $0x30] sm:$0xff] %v1469_v2  ;;  %34 = vst [vmem:[#allocation2 + $0x38] sm:$0xff] %v1469_v2  ;;  %1118 = vmatprep.subr.mxu0 %v170_v1  ;;  %1293 = vmatprep.subr.mxu1 %v170_v1  ;;  %v60_v7 = vld [vmem:[%s1980_s0 + $0x8] sm:$0xff]  ;;  %v166_v8 = vld [vmem:[%s1979_s1 + $0x50] sm:$0xff] }
   0x5   :  { %35 = vst [vmem:[#allocation2 + $0x40] sm:$0xff] %v1469_v2  ;;  %36 = vst [vmem:[#allocation2 + $0x48] sm:$0xff] %v1469_v2  ;;  %1119 = vmatpush3.msra.mxu0 %v170_v1  ;;  %1309 = vmatpush3.msra.mxu1 %v170_v1  ;;  %v61_v9 = vld [vmem:[%s1980_s0 + $0x10] sm:$0xff]  ;;  %v62_v10 = vld [vmem:[%s1980_s0 + $0x18] sm:$0xff] }
   0x6   :  { %37 = vst [vmem:[#allocation2 + $0x50] sm:$0xff] %v1469_v2  ;;  %38 = vst [vmem:[#allocation2 + $0x58] sm:$0xff] %v1469_v2  ;;  %1120 = vmatprep.subr.mxu0 %v169_v3  ;;  %1294 = vmatprep.subr.mxu1 %v169_v3  ;;  %v63_v11 = vld [vmem:[%s1980_s0 + $0x20] sm:$0xff]  ;;  %v64_v12 = vld [vmem:[%s1980_s0 + $0x28] sm:$0xff] }
   0x7   :  { %39 = vst [vmem:[#allocation2 + $0x60] sm:$0xff] %v1469_v2  ;;  %40 = vst [vmem:[#allocation2 + $0x68] sm:$0xff] %v1469_v2  ;;  %1121 = vmatpush3.msra.mxu0 %v169_v3  ;;  %1310 = vmatpush3.msra.mxu1 %v169_v3  ;;  %v65_v13 = vld [vmem:[%s1980_s0 + $0x30] sm:$0xff]  ;;  %v66_v14 = vld [vmem:[%s1980_s0 + $0x38] sm:$0xff] }
   0x8   :  { %41 = vst [vmem:[#allocation2 + $0x70] sm:$0xff] %v1469_v2  ;;  %42 = vst [vmem:[#allocation2 + $0x78] sm:$0xff] %v1469_v2  ;;  %1122 = vmatprep.subr.mxu0 %v168_v4  ;;  %1295 = vmatprep.subr.mxu1 %v168_v4  ;;  %v165_v15 = vld [vmem:[%s1979_s1 + $0x48] sm:$0xff]  ;;  %v67_v16 = vld [vmem:[%s1980_s0 + $0x40] sm:$0xff] }
   0x9   :  { %43 = vst [vmem:[#allocation2 + $0x80] sm:$0xff] %v1469_v2  ;;  %44 = vst [vmem:[#allocation2 + $0x88] sm:$0xff] %v1469_v2  ;;  %1123 = vmatpush3.msra.mxu0 %v168_v4  ;;  %1311 = vmatpush3.msra.mxu1 %v168_v4  ;;  %v68_v17 = vld [vmem:[%s1980_s0 + $0x48] sm:$0xff]  ;;  %v69_v18 = vld [vmem:[%s1980_s0 + $0x50] sm:$0xff] }
   0xa   :  { %45 = vst [vmem:[#allocation2 + $0x90] sm:$0xff] %v1469_v2  ;;  %46 = vst [vmem:[#allocation2 + $0x98] sm:$0xff] %v1469_v2  ;;  %1124 = vmatprep.subr.mxu0 %v167_v5  ;;  %1296 = vmatprep.subr.mxu1 %v167_v5  ;;  %v70_v19 = vld [vmem:[%s1980_s0 + $0x58] sm:$0xff]  ;;  %v71_v20 = vld [vmem:[%s1980_s0 + $0x60] sm:$0xff] }
   0xb   :  { %47 = vst [vmem:[#allocation2 + $0xa0] sm:$0xff] %v1469_v2  ;;  %48 = vst [vmem:[#allocation2 + $0xa8] sm:$0xff] %v1469_v2  ;;  %v72_v21 = vld [vmem:[%s1980_s0 + $0x68] sm:$0xff]  ;;  %1125 = vmatpush3.msra.mxu0 %v167_v5  ;;  %v164_v22 = vld [vmem:[%s1979_s1 + $0x40] sm:$0xff]  ;;  %1312 = vmatpush3.msra.mxu1 %v167_v5 }
   0xc   :  { %49 = vst [vmem:[#allocation2 + $0xb0] sm:$0xff] %v1469_v2  ;;  %50 = vst [vmem:[#allocation2 + $0xb8] sm:$0xff] %v1469_v2  ;;  %v73_v23 = vld [vmem:[%s1980_s0 + $0x70] sm:$0xff]  ;;  %v74_v24 = vld [vmem:[%s1980_s0 + $0x78] sm:$0xff]  ;;  %1126 = vmatprep.subr.mxu0 %v166_v8  ;;  %1297 = vmatprep.subr.mxu1 %v166_v8 }
   0xd   :  { %51 = vst [vmem:[#allocation2 + $0xc0] sm:$0xff] %v1469_v2  ;;  %52 = vst [vmem:[#allocation2 + $0xc8] sm:$0xff] %v1469_v2  ;;  %v75_v25 = vld [vmem:[%s1980_s0 + $0x80] sm:$0xff]  ;;  %v76_v26 = vld [vmem:[%s1980_s0 + $0x88] sm:$0xff]  ;;  %1127 = vmatpush3.msra.mxu0 %v166_v8  ;;  %1313 = vmatpush3.msra.mxu1 %v166_v8 }
   0xe   :  { %53 = vst [vmem:[#allocation2 + $0xd0] sm:$0xff] %v1469_v2  ;;  %54 = vst [vmem:[#allocation2 + $0xd8] sm:$0xff] %v1469_v2  ;;  %v77_v27 = vld [vmem:[%s1980_s0 + $0x90] sm:$0xff]  ;;  %v78_v28 = vld [vmem:[%s1980_s0 + $0x98] sm:$0xff]  ;;  %1128 = vmatprep.subr.mxu0 %v165_v15  ;;  %1298 = vmatprep.subr.mxu1 %v165_v15 }
   0xf   :  { %55 = vst [vmem:[#allocation2 + $0xe0] sm:$0xff] %v1469_v2  ;;  %56 = vst [vmem:[#allocation2 + $0xe8] sm:$0xff] %v1469_v2  ;;  %v79_v29 = vld [vmem:[%s1980_s0 + $0xa0] sm:$0xff]  ;;  %v80_v30 = vld [vmem:[%s1980_s0 + $0xa8] sm:$0xff]  ;;  %1129 = vmatpush3.msra.mxu0 %v165_v15  ;;  %1314 = vmatpush3.msra.mxu1 %v165_v15 }
  0x10   :  { %57 = vst [vmem:[#allocation2 + $0xf0] sm:$0xff] %v1469_v2  ;;  %58 = vst [vmem:[#allocation2 + $0xf8] sm:$0xff] %v1469_v2  ;;  %v81_v31 = vld [vmem:[%s1980_s0 + $0xb0] sm:$0xff]  ;;  %v82_v33 = vld [vmem:[%s1980_s0 + $0xb8] sm:$0xff]  ;;  %1130 = vmatprep.subr.mxu0 %v164_v22  ;;  %1299 = vmatprep.subr.mxu1 %v164_v22 }
  0x11   :  { %92 = vst.msk [vmem:[#allocation2] sm:$0xff] %vm91_vm0, %v59_v6  ;;  %93 = vst.msk [vmem:[#allocation2 + $0x8] sm:$0xff] %vm91_vm0, %v60_v7  ;;  %v163_v34 = vld [vmem:[%s1979_s1 + $0x38] sm:$0xff]  ;;  %1131 = vmatpush3.msra.mxu0 %v164_v22  ;;  %v162_v35 = vld [vmem:[%s1979_s1 + $0x30] sm:$0xff]  ;;  %1315 = vmatpush3.msra.mxu1 %v164_v22 }
  0x12   :  { %94 = vst.msk [vmem:[#allocation2 + $0x10] sm:$0xff] %vm91_vm0, %v61_v9  ;;  %95 = vst.msk [vmem:[#allocation2 + $0x18] sm:$0xff] %vm91_vm0, %v62_v10  ;;  %1132 = vmatprep.subr.mxu0 %v163_v34  ;;  %v161_v36 = vld [vmem:[%s1979_s1 + $0x28] sm:$0xff]  ;;  %1300 = vmatprep.subr.mxu1 %v163_v34  ;;  %v160_v37 = vld [vmem:[%s1979_s1 + $0x20] sm:$0xff] }
  0x13   :  { %96 = vst.msk [vmem:[#allocation2 + $0x20] sm:$0xff] %vm91_vm0, %v63_v11  ;;  %97 = vst.msk [vmem:[#allocation2 + $0x28] sm:$0xff] %vm91_vm0, %v64_v12  ;;  %1133 = vmatpush3.msra.mxu0 %v163_v34  ;;  %1316 = vmatpush3.msra.mxu1 %v163_v34  ;;  %v159_v38 = vld [vmem:[%s1979_s1 + $0x18] sm:$0xff]  ;;  %v83_v39 = vld [vmem:[%s1980_s0 + $0xc0] sm:$0xff] }
  0x14   :  { %98 = vst.msk [vmem:[#allocation2 + $0x30] sm:$0xff] %vm91_vm0, %v65_v13  ;;  %99 = vst.msk [vmem:[#allocation2 + $0x38] sm:$0xff] %vm91_vm0, %v66_v14  ;;  %1134 = vmatprep.subr.mxu0 %v162_v35  ;;  %1301 = vmatprep.subr.mxu1 %v162_v35  ;;  %v84_v40 = vld [vmem:[%s1980_s0 + $0xc8] sm:$0xff]  ;;  %v85_v41 = vld [vmem:[%s1980_s0 + $0xd0] sm:$0xff] }
  0x15   :  { %100 = vst.msk [vmem:[#allocation2 + $0x40] sm:$0xff] %vm91_vm0, %v67_v16  ;;  %101 = vst.msk [vmem:[#allocation2 + $0x48] sm:$0xff] %vm91_vm0, %v68_v17  ;;  %1135 = vmatpush3.msra.mxu0 %v162_v35  ;;  %1317 = vmatpush3.msra.mxu1 %v162_v35  ;;  %v86_v42 = vld [vmem:[%s1980_s0 + $0xd8] sm:$0xff]  ;;  %v87_v43 = vld [vmem:[%s1980_s0 + $0xe0] sm:$0xff] }
  0x16   :  { %102 = vst.msk [vmem:[#allocation2 + $0x50] sm:$0xff] %vm91_vm0, %v69_v18  ;;  %103 = vst.msk [vmem:[#allocation2 + $0x58] sm:$0xff] %vm91_vm0, %v70_v19  ;;  %1136 = vmatprep.subr.mxu0 %v161_v36  ;;  %1302 = vmatprep.subr.mxu1 %v161_v36  ;;  %v88_v44 = vld [vmem:[%s1980_s0 + $0xe8] sm:$0xff]  ;;  %v89_v45 = vld [vmem:[%s1980_s0 + $0xf0] sm:$0xff] }
  0x17   :  { %104 = vst.msk [vmem:[#allocation2 + $0x60] sm:$0xff] %vm91_vm0, %v71_v20  ;;  %105 = vst.msk [vmem:[#allocation2 + $0x68] sm:$0xff] %vm91_vm0, %v72_v21  ;;  %1137 = vmatpush3.msra.mxu0 %v161_v36  ;;  %1318 = vmatpush3.msra.mxu1 %v161_v36  ;;  %v90_v46 = vld [vmem:[%s1980_s0 + $0xf8] sm:$0xff]  ;;  %v158_v47 = vld [vmem:[%s1979_s1 + $0x10] sm:$0xff] }
  0x18   :  { %106 = vst.msk [vmem:[#allocation2 + $0x70] sm:$0xff] %vm91_vm0, %v73_v23  ;;  %107 = vst.msk [vmem:[#allocation2 + $0x78] sm:$0xff] %vm91_vm0, %v74_v24  ;;  %v124_v32 = vld [vmem:[#allocation2] sm:$0xff]  ;;  %1138 = vmatprep.subr.mxu0 %v160_v37  ;;  %1303 = vmatprep.subr.mxu1 %v160_v37  ;;  %v157_v48 = vld [vmem:[%s1979_s1 + $0x8] sm:$0xff] }
  0x19   :  { %108 = vst.msk [vmem:[#allocation2 + $0x80] sm:$0xff] %vm91_vm0, %v75_v25  ;;  %109 = vst.msk [vmem:[#allocation2 + $0x88] sm:$0xff] %vm91_vm0, %v76_v26  ;;  %1148 = vmatprep.mubr.f32.mxu0 %v124_v32  ;;  %1139 = vmatpush3.msra.mxu0 %v160_v37  ;;  %v156_v49 = vld [vmem:[%s1979_s1] sm:$0xff]  ;;  %v125_v50 = vld [vmem:[#allocation2 + $0x8] sm:$0xff] }
  0x1a   :  { %110 = vst.msk [vmem:[#allocation2 + $0x90] sm:$0xff] %vm91_vm0, %v77_v27  ;;  %111 = vst.msk [vmem:[#allocation2 + $0x98] sm:$0xff] %vm91_vm0, %v78_v28  ;;  %1140 = vmatprep.subr.mxu0 %v159_v38  ;;  %1319 = vmatpush3.msra.mxu1 %v160_v37  ;;  %v126_v51 = vld [vmem:[#allocation2 + $0x10] sm:$0xff]  ;;  %v1325_v53 = vld [vmem:[%s1981_s2 + $0x38] sm:$0xff]  }
  0x1b   :  { %112 = vst.msk [vmem:[#allocation2 + $0xa0] sm:$0xff] %vm91_vm0, %v79_v29  ;;  %113 = vst.msk [vmem:[#allocation2 + $0xa8] sm:$0xff] %vm91_vm0, %v80_v30  ;;  %1141 = vmatpush3.msra.mxu0 %v159_v38  ;;  %1304 = vmatprep.subr.mxu1 %v159_v38  ;;  %v1326_v56 = vld [vmem:[%s1981_s2 + $0x30] sm:$0xff]   ;;  %v127_v57 = vld [vmem:[#allocation2 + $0x18] sm:$0xff] }
  0x1c   :  { %114 = vst.msk [vmem:[#allocation2 + $0xb0] sm:$0xff] %vm91_vm0, %v81_v31  ;;  %115 = vst.msk [vmem:[#allocation2 + $0xb8] sm:$0xff] %vm91_vm0, %v82_v33  ;;  %1142 = vmatprep.subr.mxu0 %v158_v47  ;;  %1320 = vmatpush3.msra.mxu1 %v159_v38  ;;  %v128_v58 = vld [vmem:[#allocation2 + $0x20] sm:$0xff]  ;;  %v129_v61 = vld [vmem:[#allocation2 + $0x28] sm:$0xff] }
  0x1d   :  { %116 = vst.msk [vmem:[#allocation2 + $0xc0] sm:$0xff] %vm91_vm0, %v83_v39  ;;  %117 = vst.msk [vmem:[#allocation2 + $0xc8] sm:$0xff] %vm91_vm0, %v84_v40  ;;  %1143 = vmatpush3.msra.mxu0 %v158_v47  ;;  %1305 = vmatprep.subr.mxu1 %v158_v47  ;;  %v130_v62 = vld [vmem:[#allocation2 + $0x30] sm:$0xff]  ;;  %v131_v1 = vld [vmem:[#allocation2 + $0x38] sm:$0xff] }
  0x1e   :  { %118 = vst.msk [vmem:[#allocation2 + $0xd0] sm:$0xff] %vm91_vm0, %v85_v41  ;;  %119 = vst.msk [vmem:[#allocation2 + $0xd8] sm:$0xff] %vm91_vm0, %v86_v42  ;;  %1144 = vmatprep.subr.mxu0 %v157_v48  ;;  %1321 = vmatpush3.msra.mxu1 %v158_v47  ;;  %v132_v2 = vld [vmem:[#allocation2 + $0x40] sm:$0xff]  ;;  %v133_v5 = vld [vmem:[#allocation2 + $0x48] sm:$0xff] }
  0x1f   :  { %120 = vst.msk [vmem:[#allocation2 + $0xe0] sm:$0xff] %vm91_vm0, %v87_v43  ;;  %121 = vst.msk [vmem:[#allocation2 + $0xe8] sm:$0xff] %vm91_vm0, %v88_v44  ;;  %1145 = vmatpush3.msra.mxu0 %v157_v48  ;;  %1306 = vmatprep.subr.mxu1 %v157_v48  ;;  %v134_v6 = vld [vmem:[#allocation2 + $0x50] sm:$0xff]  ;;  %v135_v9 = vld [vmem:[#allocation2 + $0x58] sm:$0xff] }
  0x20   :  { %122 = vst.msk [vmem:[#allocation2 + $0xf0] sm:$0xff] %vm91_vm0, %v89_v45  ;;  %123 = vst.msk [vmem:[#allocation2 + $0xf8] sm:$0xff] %vm91_vm0, %v90_v46  ;;  %1146 = vmatprep.subr.mxu0 %v156_v49  ;;  %1322 = vmatpush3.msra.mxu1 %v157_v48  ;;  %v140_v52 = vld [vmem:[#allocation2 + $0x80] sm:$0xff]  ;;  %v141_v54 = vld [vmem:[#allocation2 + $0x88] sm:$0xff] }
  0x21   :  { %1147 = vmatpush3.msra.mxu0 %v156_v49  ;;  %1307 = vmatprep.subr.mxu1 %v156_v49  ;;  %v142_v55 = vld [vmem:[#allocation2 + $0x90] sm:$0xff]  ;;  %v143_v59 = vld [vmem:[#allocation2 + $0x98] sm:$0xff]  ;;  %v136_v10 = vld [vmem:[#allocation2 + $0x60] sm:$0xff] }
  0x22   :  { %1149 = vmatmul.mubr.f32.vlgmr.msra.gmra.mxu0 %v125_v50  ;;  %1323 = vmatpush3.msra.mxu1 %v156_v49  ;;  %v144_v60 = vld [vmem:[#allocation2 + $0xa0] sm:$0xff]  ;;  %v145_v63 = vld [vmem:[#allocation2 + $0xa8] sm:$0xff]  ;;  %v138_v14 = vld [vmem:[#allocation2 + $0x70] sm:$0xff] }
  0x23   :  { %1151 = vmatprep.mubr.f32.mxu0 %v126_v51  ;;  %1172 = vmatprep.mubr.f32.mxu1 %v140_v52  ;;  %v146_v0 = vld [vmem:[#allocation2 + $0xb0] sm:$0xff]  ;;  %v147_v3 = vld [vmem:[#allocation2 + $0xb8] sm:$0xff]  ;;  %v137_v13 = vld [vmem:[#allocation2 + $0x68] sm:$0xff] }
  0x24   :  { %1173 = vmatmul.mubr.f32.vlgmr.msra.gmra.mxu1 %v141_v54  ;;  %1196 = vmatprep.subr.bf16.mxu1 %v1325_v53  ;;  %v148_v4 = vld [vmem:[#allocation2 + $0xc0] sm:$0xff]  ;;  %v149_v7 = vld [vmem:[#allocation2 + $0xc8] sm:$0xff]  ;;  %v139_v17 = vld [vmem:[#allocation2 + $0x78] sm:$0xff] }
  0x25   :  { %1175 = vmatprep.mubr.f32.mxu1 %v142_v55  ;;  %1197 = vmatpush3.bf16.msra.mxu1 %v1325_v53  ;;  %v150_v8 = vld [vmem:[#allocation2 + $0xd0] sm:$0xff]  ;;  %v151_v11 = vld [vmem:[#allocation2 + $0xd8] sm:$0xff]  ;;  %v1327_v19 = vld [vmem:[%s1981_s2 + $0x28] sm:$0xff]  }
  0x26   :  { %1152 = vmatmul.mubr.f32.gmra.mxu0 %v127_v57  ;;  %1198 = vmatprep.subr.bf16.mxu1 %v1326_v56  ;;  %v152_v12 = vld [vmem:[#allocation2 + $0xe0] sm:$0xff]  ;;  %v153_v15 = vld [vmem:[#allocation2 + $0xe8] sm:$0xff]  ;;  %v1329_v21 = vld [vmem:[%s1981_s2 + $0x18] sm:$0xff]  }
  0x27   :  { %1154 = vmatprep.mubr.f32.mxu0 %v128_v58  ;;  %v154_v16 = vld [vmem:[#allocation2 + $0xf0] sm:$0xff]  ;;  %v155_v18 = vld [vmem:[#allocation2 + $0xf8] sm:$0xff]  ;;  %v1328_v20 = vld [vmem:[%s1981_s2 + $0x20] sm:$0xff]  }
  0x28   :  { %1176 = vmatmul.mubr.f32.gmra.mxu1 %v143_v59  ;;  %v1330_v22 = vld [vmem:[%s1981_s2 + $0x10] sm:$0xff]   ;;  %v1331_v23 = vld [vmem:[%s1981_s2 + $0x8] sm:$0xff]   ;;  %v1332_v24 = vld [vmem:[%s1981_s2] sm:$0xff]  }
  0x29   :  { %1178 = vmatprep.mubr.f32.mxu1 %v144_v60  ;;  %1199 = vmatpush3.bf16.msra.mxu1 %v1326_v56  ;;  %v1333_v25 = vld [vmem:[%s1982_s3 + $0x38] sm:$0xff]   ;;  %v1334_v26 = vld [vmem:[%s1982_s3 + $0x30] sm:$0xff]   ;;  %v1719_v27 = vld [vmem:[%s1983_s4] ss:$0 sm:$0xff] }
  0x2a   :  { %1155 = vmatmul.mubr.f32.gmra.mxu0 %v129_v61  ;;  %1200 = vmatprep.subr.bf16.mxu1 %v1327_v19 }
  0x2b   :  { %1157 = vmatprep.mubr.f32.mxu0 %v130_v62  ;;  %1244 = vmatprep.subr.bf16.mxu0 %v1333_v25 }
  0x2c   :  { %1179 = vmatmul.mubr.f32.gmra.mxu1 %v145_v63  ;;  %1245 = vmatpush3.bf16.msra.mxu0 %v1333_v25 }
  0x2d   :  { %1181 = vmatprep.mubr.f32.mxu1 %v146_v0  ;;  %1201 = vmatpush3.bf16.msra.mxu1 %v1327_v19 }
  0x2e   :  { %1158 = vmatmul.mubr.f32.gmra.mxu0 %v131_v1  ;;  %1202 = vmatprep.subr.bf16.mxu1 %v1328_v20 }
  0x2f   :  { %1160 = vmatprep.mubr.f32.mxu0 %v132_v2  ;;  %1246 = vmatprep.subr.bf16.mxu0 %v1334_v26 }
  0x30   :  { %1182 = vmatmul.mubr.f32.gmra.mxu1 %v147_v3  ;;  %1247 = vmatpush3.bf16.msra.mxu0 %v1334_v26 }
  0x31   :  { %1184 = vmatprep.mubr.f32.mxu1 %v148_v4  ;;  %1203 = vmatpush3.bf16.msra.mxu1 %v1328_v20 }
  0x32   :  { %1161 = vmatmul.mubr.f32.gmra.mxu0 %v133_v5  ;;  %1204 = vmatprep.subr.bf16.mxu1 %v1329_v21 }
  0x33   :  { %1163 = vmatprep.mubr.f32.mxu0 %v134_v6 }
  0x34   :  { %1185 = vmatmul.mubr.f32.gmra.mxu1 %v149_v7 }
  0x35   :  { %1187 = vmatprep.mubr.f32.mxu1 %v150_v8  ;;  %1205 = vmatpush3.bf16.msra.mxu1 %v1329_v21 }
  0x36   :  { %1164 = vmatmul.mubr.f32.gmra.mxu0 %v135_v9  ;;  %1206 = vmatprep.subr.bf16.mxu1 %v1330_v22 }
  0x37   :  { %1166 = vmatprep.mubr.f32.mxu0 %v136_v10 }
  0x38   :  { %1188 = vmatmul.mubr.f32.gmra.mxu1 %v151_v11 }
  0x39   :  { %1190 = vmatprep.mubr.f32.mxu1 %v152_v12  ;;  %1207 = vmatpush3.bf16.msra.mxu1 %v1330_v22 }
  0x3a   :  { %1167 = vmatmul.mubr.f32.gmra.mxu0 %v137_v13  ;;  %1208 = vmatprep.subr.bf16.mxu1 %v1331_v23 }
  0x3b   :  { %1169 = vmatprep.mubr.f32.mxu0 %v138_v14 }
  0x3c   :  { %1191 = vmatmul.mubr.f32.gmra.mxu1 %v153_v15 }
  0x3d   :  { %1193 = vmatprep.mubr.f32.mxu1 %v154_v16  ;;  %1209 = vmatpush3.bf16.msra.mxu1 %v1331_v23 }
  0x3e   :  { %1170 = vmatmul.mubr.f32.gmra.mxu0 %v139_v17  ;;  %1210 = vmatprep.subr.bf16.mxu1 %v1332_v24 }
  0x40   :  { %1194 = vmatmul.mubr.f32.gmra.mxu1 %v155_v18 }
  0x41   :  { %1211 = vmatpush3.bf16.msra.mxu1 %v1332_v24 }
  0xe2   :  { %v1150_v28 = vpop.f32.mrf.mxu0 }
  0xe3   :  { %v251_v29 = vadd.f32 %v1150_v28, %v1719_v27 }
  0xe4   :  { %v245_v30 = vpop.f32.mrf.mxu0  ;;  %v1174_v31 = vpop.f32.mrf.mxu1 }
  0xe5   :  { %v246_v32 = vadd.f32 %v1719_v27, %v245_v30  ;;  %1341 = vtanh.f32 %v251_v29  ;;  %v331_v1 = vadd.f32 %v1174_v31, %v1719_v27 }
  0xe6   :  { %v1153_v33 = vpop.f32.mrf.mxu0  ;;  %v325_v34 = vpop.f32.mrf.mxu1 }
  0xe7   :  { %1343 = vtanh.f32 %v246_v32  ;;  %v261_v35 = vadd.f32 %v1153_v33, %v1719_v27  ;;  %v326_v8 = vadd.f32 %v1719_v27, %v325_v34 }
  0xe8   :  { %v255_v36 = vpop.f32.mrf.mxu0  ;;  %v1724_v37 = vpop.f32.mrf.mxu1 }
  0xe9   :  { %v256_v38 = vadd.f32 %v1719_v27, %v255_v36  ;;  %1345 = vtanh.f32 %v261_v35  ;;  %v341_v20 = vadd.f32 %v1724_v37, %v1719_v27 }
  0xea   :  { %v1156_v39 = vpop.f32.mrf.mxu0  ;;  %v1727_v40 = vpop.f32.mrf.mxu1 }
  0xeb   :  { %1347 = vtanh.f32 %v256_v38  ;;  %v271_v41 = vadd.f32 %v1156_v39, %v1719_v27  ;;  %v336_v25 = vadd.f32 %v1719_v27, %v1727_v40 }
  0xec   :  { %v265_v42 = vpop.f32.mrf.mxu0  ;;  %v1180_v44 = vpop.f32.mrf.mxu1 }
  0xed   :  { %v266_v43 = vadd.f32 %v1719_v27, %v265_v42  ;;  %1349 = vtanh.f32 %v271_v41  ;;  %v351_v22 = vadd.f32 %v1180_v44, %v1719_v27 }
  0xee   :  { %v1159_v45 = vpop.f32.mrf.mxu0  ;;  %v345_v49 = vpop.f32.mrf.mxu1 }
  0xef   :  { %1351 = vtanh.f32 %v266_v43  ;;  %v281_v46 = vadd.f32 %v1159_v45, %v1719_v27  ;;  %v346_v24 = vadd.f32 %v1719_v27, %v345_v49 }
  0xf0   :  { %v275_v47 = vpop.f32.mrf.mxu0  ;;  %v1183_v57 = vpop.f32.mrf.mxu1 }
  0xf1   :  { %v276_v48 = vadd.f32 %v1719_v27, %v275_v47  ;;  %1353 = vtanh.f32 %v281_v46  ;;  %v361_v34 = vadd.f32 %v1183_v57, %v1719_v27 }
  0xf2   :  { %v1162_v50 = vpop.f32.mrf.mxu0  ;;  %v1342_v51 = vpop.eup %1341 }
  0xf3   :  { %1355 = vtanh.f32 %v276_v48  ;;  %v291_v52 = vadd.f32 %v1162_v50, %v1719_v27  ;;  %v355_v2 = vpop.f32.mrf.mxu1 }
  0xf4   :  { %v1344_v53 = vpop.eup %1343  ;;  %v285_v54 = vpop.f32.mrf.mxu0  ;;  %v356_v40 = vadd.f32 %v1719_v27, %v355_v2 }
  0xf5   :  { %v286_v55 = vadd.f32 %v1719_v27, %v285_v54  ;;  %v453_v56 = vpack.c.bf16 %v1342_v51, %v1344_v53  ;;  %1357 = vtanh.f32 %v291_v52  ;;  %v1186_v11 = vpop.f32.mrf.mxu1 }
  0xf6   :  { %v1165_v58 = vpop.f32.mrf.mxu0  ;;  %v1346_v59 = vpop.eup %1345  ;;  %v371_v36 = vadd.f32 %v1186_v11, %v1719_v27 }
  0xf7   :  { %1359 = vtanh.f32 %v286_v55  ;;  %v301_v60 = vadd.f32 %v1165_v58, %v1719_v27  ;;  %1212 = vmatprep.mubr.bf16.mxu1 %v453_v56  ;;  %v365_v19 = vpop.f32.mrf.mxu1 }
  0xf8   :  { %v1348_v61 = vpop.eup %1347  ;;  %v295_v62 = vpop.f32.mrf.mxu0  ;;  %v366_v38 = vadd.f32 %v1719_v27, %v365_v19  ;;  %v1780_v19 = vld [vmem:[%s1984_s5] ss:$0 sm:$0xff] }
  0xf9   :  { %v296_v63 = vadd.f32 %v1719_v27, %v295_v62  ;;  %v454_v0 = vpack.c.bf16 %v1346_v59, %v1348_v61  ;;  %1361 = vtanh.f32 %v301_v60  ;;  %v1189_v28 = vpop.f32.mrf.mxu1 }
  0xfa   :  { %v1168_v3 = vpop.f32.mrf.mxu0  ;;  %v1350_v4 = vpop.eup %1349  ;;  %v381_v48 = vadd.f32 %v1189_v28, %v1719_v27 }
  0xfb   :  { %1363 = vtanh.f32 %v296_v63  ;;  %v311_v5 = vadd.f32 %v1168_v3, %v1719_v27  ;;  %1213 = vmatmul.mubr.bf16.vlgmr.msra.gmra.mxu1 %v454_v0  ;;  %v375_v32 = vpop.f32.mrf.mxu1 }
  0xfc   :  { %v1352_v6 = vpop.eup %1351  ;;  %v305_v7 = vpop.f32.mrf.mxu0  ;;  %1365 = vtanh.f32 %v331_v1  ;;  %v376_v54 = vadd.f32 %v1719_v27, %v375_v32 }
  0xfd   :  { %v306_v9 = vadd.f32 %v1719_v27, %v305_v7  ;;  %v455_v10 = vpack.c.bf16 %v1350_v4, %v1352_v6  ;;  %1367 = vtanh.f32 %v311_v5  ;;  %v1192_v42 = vpop.f32.mrf.mxu1 }
  0xfe   :  { %v1171_v12 = vpop.f32.mrf.mxu0  ;;  %v1354_v13 = vpop.eup %1353  ;;  %v391_v50 = vadd.f32 %v1192_v42, %v1719_v27 }
  0xff   :  { %1369 = vtanh.f32 %v306_v9  ;;  %v321_v14 = vadd.f32 %v1171_v12, %v1719_v27  ;;  %1216 = vmatprep.mubr.bf16.mxu1 %v455_v10  ;;  %v385_v47 = vpop.f32.mrf.mxu1 }
 0x100   :  { %v1356_v15 = vpop.eup %1355  ;;  %v315_v16 = vpop.f32.mrf.mxu0  ;;  %1371 = vtanh.f32 %v326_v8  ;;  %v386_v52 = vadd.f32 %v1719_v27, %v385_v47 }
 0x101   :  { %v316_v17 = vadd.f32 %v1719_v27, %v315_v16  ;;  %v456_v18 = vpack.c.bf16 %v1354_v13, %v1356_v15  ;;  %1373 = vtanh.f32 %v321_v14  ;;  %v1195_v56 = vpop.f32.mrf.mxu1  ;;  %v1336_v13 = vld [vmem:[%s1982_s3 + $0x20] sm:$0xff]   ;;  %v1337_v14 = vld [vmem:[%s1982_s3 + $0x18] sm:$0xff]   ;;  %v1338_v15 = vld [vmem:[%s1982_s3 + $0x10] sm:$0xff]  }
 0x102   :  { %v1358_v21 = vpop.eup %1357  ;;  %v401_v62 = vadd.f32 %v1195_v56, %v1719_v27  ;;  %v1339_v16 = vld [vmem:[%s1982_s3 + $0x8] sm:$0xff]  }
 0x103   :  { %1375 = vtanh.f32 %v316_v17  ;;  %1217 = vmatmul.mubr.bf16.gmra.mxu1 %v456_v18  ;;  %v395_v59 = vpop.f32.mrf.mxu1  ;;  %v1340_v17 = vld [vmem:[%s1982_s3] sm:$0xff]  }
 0x104   :  { %v1360_v23 = vpop.eup %1359  ;;  %1377 = vtanh.f32 %v341_v20  ;;  %v396_v0 = vadd.f32 %v1719_v27, %v395_v59  ;;  %v1335_v27 = vld [vmem:[%s1982_s3 + $0x28] sm:$0xff]  }
 0x105   :  { %v457_v26 = vpack.c.bf16 %v1358_v21, %v1360_v23  ;;  %1379 = vtanh.f32 %v351_v22  ;;  %1248 = vmatprep.subr.bf16.mxu0 %v1335_v27 }
 0x106   :  { %v1362_v29 = vpop.eup %1361  ;;  %1381 = vtanh.f32 %v346_v24  ;;  %1249 = vmatpush3.bf16.msra.mxu0 %v1335_v27 }
 0x107   :  { %1220 = vmatprep.mubr.bf16.mxu1 %v457_v26  ;;  %1383 = vtanh.f32 %v336_v25  ;;  %1250 = vmatprep.subr.bf16.mxu0 %v1336_v13 }
 0x108   :  { %v1364_v30 = vpop.eup %1363  ;;  %1385 = vtanh.f32 %v361_v34 }
 0x109   :  { %v458_v31 = vpack.c.bf16 %v1362_v29, %v1364_v30  ;;  %v1366_v33 = vpop.eup %1365  ;;  %1387 = vtanh.f32 %v371_v36 }
 0x10a   :  { %v1368_v35 = vpop.eup %1367  ;;  %1389 = vtanh.f32 %v366_v38  ;;  %1251 = vmatpush3.bf16.msra.mxu0 %v1336_v13 }
 0x10b   :  { %1221 = vmatmul.mubr.bf16.gmra.mxu1 %v458_v31  ;;  %1391 = vtanh.f32 %v356_v40  ;;  %1252 = vmatprep.subr.bf16.mxu0 %v1337_v14 }
 0x10c   :  { %v1370_v37 = vpop.eup %1369  ;;  %1393 = vtanh.f32 %v381_v48 }
 0x10d   :  { %v1372_v39 = vpop.eup %1371  ;;  %v459_v41 = vpack.c.bf16 %v1368_v35, %v1370_v37  ;;  %1395 = vtanh.f32 %v391_v50 }
 0x10e   :  { %v1374_v43 = vpop.eup %1373  ;;  %v461_v45 = vpack.c.bf16 %v1366_v33, %v1372_v39  ;;  %1397 = vtanh.f32 %v386_v52  ;;  %1253 = vmatpush3.bf16.msra.mxu0 %v1337_v14 }
 0x10f   :  { %1224 = vmatprep.mubr.bf16.mxu1 %v459_v41  ;;  %1399 = vtanh.f32 %v376_v54  ;;  %1254 = vmatprep.subr.bf16.mxu0 %v1338_v15 }
 0x110   :  { %v1376_v44 = vpop.eup %1375  ;;  %1401 = vtanh.f32 %v401_v62 }
 0x111   :  { %v460_v46 = vpack.c.bf16 %v1374_v43, %v1376_v44  ;;  %v1378_v49 = vpop.eup %1377  ;;  %1403 = vtanh.f32 %v396_v0 }
 0x112   :  { %v1380_v51 = vpop.eup %1379  ;;  %1255 = vmatpush3.bf16.msra.mxu0 %v1338_v15 }
 0x113   :  { %1225 = vmatmul.mubr.bf16.gmra.mxu1 %v460_v46  ;;  %v1382_v53 = vpop.eup %1381  ;;  %1256 = vmatprep.subr.bf16.mxu0 %v1339_v16 }
 0x114   :  { %1228 = vmatprep.mubr.bf16.mxu1 %v461_v45  ;;  %v1384_v55 = vpop.eup %1383  ;;  %v463_v57 = vpack.c.bf16 %v1380_v51, %v1382_v53 }
 0x115   :  { %v462_v58 = vpack.c.bf16 %v1378_v49, %v1384_v55  ;;  %v1386_v60 = vpop.eup %1385 }
 0x116   :  { %v1388_v61 = vpop.eup %1387  ;;  %1257 = vmatpush3.bf16.msra.mxu0 %v1339_v16 }
 0x117   :  { %v1390_v63 = vpop.eup %1389  ;;  %1258 = vmatprep.subr.bf16.mxu0 %v1340_v17 }
 0x118   :  { %v1392_v1 = vpop.eup %1391  ;;  %v465_v2 = vpack.c.bf16 %v1388_v61, %v1390_v63 }
 0x119   :  { %v464_v3 = vpack.c.bf16 %v1386_v60, %v1392_v1  ;;  %v1394_v4 = vpop.eup %1393 }
 0x11a   :  { %v1396_v5 = vpop.eup %1395  ;;  %1259 = vmatpush3.bf16.msra.mxu0 %v1340_v17 }
 0x11b   :  { %1229 = vmatmul.mubr.bf16.gmra.mxu1 %v462_v58  ;;  %v1398_v6 = vpop.eup %1397 }
 0x11c   :  { %1232 = vmatprep.mubr.bf16.mxu1 %v463_v57  ;;  %v1400_v7 = vpop.eup %1399  ;;  %v467_v8 = vpack.c.bf16 %v1396_v5, %v1398_v6 }
 0x11d   :  { %v466_v9 = vpack.c.bf16 %v1394_v4, %v1400_v7  ;;  %v1402_v10 = vpop.eup %1401 }
 0x11e   :  { %v1404_v11 = vpop.eup %1403 }
 0x11f   :  { %v468_v12 = vpack.c.bf16 %v1402_v10, %v1404_v11 }
 0x123   :  { %1233 = vmatmul.mubr.bf16.gmra.mxu1 %v464_v3 }
 0x124   :  { %1236 = vmatprep.mubr.bf16.mxu1 %v465_v2 }
 0x12b   :  { %1237 = vmatmul.mubr.bf16.gmra.mxu1 %v466_v9 }
 0x12c   :  { %1240 = vmatprep.mubr.bf16.mxu1 %v467_v8 }
 0x133   :  { %1241 = vmatmul.mubr.bf16.gmra.mxu1 %v468_v12 }
 0x1bb   :  { %v1214_v18 = vpop.f32.mrf.mxu1 }
 0x1bc   :  { %v566_v24 = vadd.f32 %v1214_v18, %v1780_v19 }
 0x1bd   :  { %v557_v20 = vpop.f32.mrf.mxu1 }
 0x1be   :  { %v558_v21 = vadd.f32 %v1780_v19, %v557_v20 }
 0x1bf   :  { %v1215_v22 = vpop.f32.mrf.mxu1 }
 0x1c0   :  { %v569_v23 = vadd.f32 %v1215_v22, %v1780_v19  ;;  %1405 = vtanh.f32 %v558_v21 }
 0x1c1   :  { %v560_v25 = vpop.f32.mrf.mxu1 }
 0x1c2   :  { %v561_v26 = vadd.f32 %v1780_v19, %v560_v25  ;;  %1407 = vtanh.f32 %v569_v23 }
 0x1c3   :  { %v1218_v28 = vpop.f32.mrf.mxu1 }
 0x1c4   :  { %1409 = vtanh.f32 %v561_v26  ;;  %v582_v33 = vadd.f32 %v1218_v28, %v1780_v19 }
 0x1c5   :  { %1411 = vtanh.f32 %v566_v24  ;;  %v573_v29 = vpop.f32.mrf.mxu1 }
 0x1c6   :  { %v574_v30 = vadd.f32 %v1780_v19, %v573_v29 }
 0x1c7   :  { %v1219_v31 = vpop.f32.mrf.mxu1 }
 0x1c8   :  { %v585_v32 = vadd.f32 %v1219_v31, %v1780_v19  ;;  %1413 = vtanh.f32 %v574_v30 }
 0x1c9   :  { %v576_v34 = vpop.f32.mrf.mxu1 }
 0x1ca   :  { %v577_v35 = vadd.f32 %v1780_v19, %v576_v34  ;;  %1415 = vtanh.f32 %v585_v32 }
 0x1cb   :  { %v1222_v36 = vpop.f32.mrf.mxu1 }
 0x1cc   :  { %1417 = vtanh.f32 %v577_v35  ;;  %v598_v44 = vadd.f32 %v1222_v36, %v1780_v19 }
 0x1cd   :  { %1419 = vtanh.f32 %v582_v33  ;;  %v589_v37 = vpop.f32.mrf.mxu1  ;;  %v1406_v39 = vpop.eup %1405 }
 0x1ce   :  { %v590_v38 = vadd.f32 %v1780_v19, %v589_v37 }
 0x1cf   :  { %v1223_v40 = vpop.f32.mrf.mxu1  ;;  %v1408_v41 = vpop.eup %1407 }
 0x1d0   :  { %v601_v42 = vadd.f32 %v1223_v40, %v1780_v19  ;;  %1421 = vtanh.f32 %v590_v38 }
 0x1d1   :  { %v1410_v43 = vpop.eup %1409  ;;  %v592_v45 = vpop.f32.mrf.mxu1 }
 0x1d2   :  { %v1412_v46 = vpop.eup %1411  ;;  %v593_v47 = vadd.f32 %v1780_v19, %v592_v45  ;;  %v733_v48 = vpack.c.bf16 %v1410_v43, %v1406_v39  ;;  %1423 = vtanh.f32 %v601_v42 }
 0x1d3   :  { %v1226_v49 = vpop.f32.mrf.mxu1  ;;  %v734_v50 = vpack.c.bf16 %v1408_v41, %v1412_v46 }
 0x1d4   :  { %1425 = vtanh.f32 %v593_v47  ;;  %1260 = vmatprep.mubr.bf16.mxu0 %v733_v48  ;;  %v614_v58 = vadd.f32 %v1226_v49, %v1780_v19 }
 0x1d5   :  { %1427 = vtanh.f32 %v598_v44  ;;  %v605_v51 = vpop.f32.mrf.mxu1  ;;  %1261 = vmatmul.mubr.bf16.vlgmr.msra.gmra.mxu0 %v734_v50  ;;  %v1414_v53 = vpop.eup %1413 }
 0x1d6   :  { %v606_v52 = vadd.f32 %v1780_v19, %v605_v51 }
 0x1d7   :  { %v1227_v54 = vpop.f32.mrf.mxu1  ;;  %v1416_v55 = vpop.eup %1415 }
 0x1d8   :  { %v617_v56 = vadd.f32 %v1227_v54, %v1780_v19  ;;  %1429 = vtanh.f32 %v606_v52 }
 0x1d9   :  { %v1418_v57 = vpop.eup %1417  ;;  %v608_v59 = vpop.f32.mrf.mxu1 }
 0x1da   :  { %v1420_v60 = vpop.eup %1419  ;;  %v609_v61 = vadd.f32 %v1780_v19, %v608_v59  ;;  %v735_v62 = vpack.c.bf16 %v1418_v57, %v1414_v53  ;;  %1431 = vtanh.f32 %v617_v56 }
 0x1db   :  { %v1230_v63 = vpop.f32.mrf.mxu1  ;;  %v736_v0 = vpack.c.bf16 %v1416_v55, %v1420_v60 }
 0x1dc   :  { %1433 = vtanh.f32 %v609_v61  ;;  %1264 = vmatprep.mubr.bf16.mxu0 %v735_v62  ;;  %v630_v8 = vadd.f32 %v1230_v63, %v1780_v19 }
 0x1dd   :  { %1435 = vtanh.f32 %v614_v58  ;;  %v621_v1 = vpop.f32.mrf.mxu1  ;;  %1265 = vmatmul.mubr.bf16.gmra.mxu0 %v736_v0  ;;  %v1422_v3 = vpop.eup %1421 }
 0x1de   :  { %v622_v2 = vadd.f32 %v1780_v19, %v621_v1 }
 0x1df   :  { %v1231_v4 = vpop.f32.mrf.mxu1  ;;  %v1424_v5 = vpop.eup %1423 }
 0x1e0   :  { %v633_v6 = vadd.f32 %v1231_v4, %v1780_v19  ;;  %1437 = vtanh.f32 %v622_v2  ;;  %v1817_v4 = vld [vmem:[%s1985_s6] ss:$0 sm:$0xff] }
 0x1e1   :  { %v1426_v7 = vpop.eup %1425  ;;  %v624_v9 = vpop.f32.mrf.mxu1 }
 0x1e2   :  { %v1428_v10 = vpop.eup %1427  ;;  %v625_v11 = vadd.f32 %v1780_v19, %v624_v9  ;;  %v737_v12 = vpack.c.bf16 %v1426_v7, %v1422_v3  ;;  %1439 = vtanh.f32 %v633_v6 }
 0x1e3   :  { %v1234_v27 = vpop.f32.mrf.mxu1  ;;  %v738_v13 = vpack.c.bf16 %v1424_v5, %v1428_v10 }
 0x1e4   :  { %1441 = vtanh.f32 %v625_v11  ;;  %1268 = vmatprep.mubr.bf16.mxu0 %v737_v12  ;;  %v646_v22 = vadd.f32 %v1234_v27, %v1780_v19 }
 0x1e5   :  { %1443 = vtanh.f32 %v630_v8  ;;  %v637_v14 = vpop.f32.mrf.mxu1  ;;  %1269 = vmatmul.mubr.bf16.gmra.mxu0 %v738_v13  ;;  %v1430_v16 = vpop.eup %1429 }
 0x1e6   :  { %v638_v15 = vadd.f32 %v1780_v19, %v637_v14 }
 0x1e7   :  { %v1235_v17 = vpop.f32.mrf.mxu1  ;;  %v1432_v18 = vpop.eup %1431 }
 0x1e8   :  { %v649_v20 = vadd.f32 %v1235_v17, %v1780_v19  ;;  %1445 = vtanh.f32 %v638_v15 }
 0x1e9   :  { %v1434_v21 = vpop.eup %1433  ;;  %v640_v23 = vpop.f32.mrf.mxu1 }
 0x1ea   :  { %v1436_v24 = vpop.eup %1435  ;;  %v641_v25 = vadd.f32 %v1780_v19, %v640_v23  ;;  %v739_v26 = vpack.c.bf16 %v1434_v21, %v1430_v16  ;;  %1447 = vtanh.f32 %v649_v20 }
 0x1eb   :  { %v1238_v28 = vpop.f32.mrf.mxu1  ;;  %v740_v29 = vpack.c.bf16 %v1432_v18, %v1436_v24 }
 0x1ec   :  { %1449 = vtanh.f32 %v641_v25  ;;  %1272 = vmatprep.mubr.bf16.mxu0 %v739_v26  ;;  %v662_v37 = vadd.f32 %v1238_v28, %v1780_v19 }
 0x1ed   :  { %1451 = vtanh.f32 %v646_v22  ;;  %v653_v30 = vpop.f32.mrf.mxu1  ;;  %1273 = vmatmul.mubr.bf16.gmra.mxu0 %v740_v29  ;;  %v1438_v32 = vpop.eup %1437 }
 0x1ee   :  { %v654_v31 = vadd.f32 %v1780_v19, %v653_v30 }
 0x1ef   :  { %v1239_v33 = vpop.f32.mrf.mxu1  ;;  %v1440_v34 = vpop.eup %1439 }
 0x1f0   :  { %v665_v35 = vadd.f32 %v1239_v33, %v1780_v19  ;;  %1453 = vtanh.f32 %v654_v31 }
 0x1f1   :  { %v1442_v36 = vpop.eup %1441  ;;  %v656_v38 = vpop.f32.mrf.mxu1 }
 0x1f2   :  { %v1444_v39 = vpop.eup %1443  ;;  %v657_v40 = vadd.f32 %v1780_v19, %v656_v38  ;;  %v741_v41 = vpack.c.bf16 %v1442_v36, %v1438_v32  ;;  %1455 = vtanh.f32 %v665_v35 }
 0x1f3   :  { %v1242_v42 = vpop.f32.mrf.mxu1  ;;  %v742_v43 = vpack.c.bf16 %v1440_v34, %v1444_v39 }
 0x1f4   :  { %1457 = vtanh.f32 %v657_v40  ;;  %1276 = vmatprep.mubr.bf16.mxu0 %v741_v41  ;;  %v678_v51 = vadd.f32 %v1242_v42, %v1780_v19 }
 0x1f5   :  { %1459 = vtanh.f32 %v662_v37  ;;  %v669_v44 = vpop.f32.mrf.mxu1  ;;  %1277 = vmatmul.mubr.bf16.gmra.mxu0 %v742_v43  ;;  %v1446_v46 = vpop.eup %1445 }
 0x1f6   :  { %v670_v45 = vadd.f32 %v1780_v19, %v669_v44 }
 0x1f7   :  { %v1243_v47 = vpop.f32.mrf.mxu1  ;;  %v1448_v48 = vpop.eup %1447 }
 0x1f8   :  { %v681_v49 = vadd.f32 %v1243_v47, %v1780_v19  ;;  %1461 = vtanh.f32 %v670_v45 }
 0x1f9   :  { %v1450_v50 = vpop.eup %1449  ;;  %v672_v52 = vpop.f32.mrf.mxu1 }
 0x1fa   :  { %v1452_v53 = vpop.eup %1451  ;;  %v673_v54 = vadd.f32 %v1780_v19, %v672_v52  ;;  %v743_v55 = vpack.c.bf16 %v1450_v50, %v1446_v46  ;;  %1463 = vtanh.f32 %v681_v49 }
 0x1fb   :  { %v744_v56 = vpack.c.bf16 %v1448_v48, %v1452_v53 }
 0x1fc   :  { %1465 = vtanh.f32 %v673_v54  ;;  %1280 = vmatprep.mubr.bf16.mxu0 %v743_v55 }
 0x1fd   :  { %1467 = vtanh.f32 %v678_v51  ;;  %1281 = vmatmul.mubr.bf16.gmra.mxu0 %v744_v56  ;;  %v1454_v57 = vpop.eup %1453 }
 0x1ff   :  { %v1456_v58 = vpop.eup %1455 }
 0x201   :  { %v1458_v59 = vpop.eup %1457 }
 0x202   :  { %v1460_v60 = vpop.eup %1459  ;;  %v745_v61 = vpack.c.bf16 %v1458_v59, %v1454_v57 }
 0x203   :  { %v746_v62 = vpack.c.bf16 %v1456_v58, %v1460_v60 }
 0x204   :  { %1284 = vmatprep.mubr.bf16.mxu0 %v745_v61 }
 0x205   :  { %1285 = vmatmul.mubr.bf16.gmra.mxu0 %v746_v62  ;;  %v1462_v63 = vpop.eup %1461 }
 0x207   :  { %v1464_v0 = vpop.eup %1463 }
 0x209   :  { %v1466_v1 = vpop.eup %1465 }
 0x20a   :  { %v1468_v2 = vpop.eup %1467  ;;  %v747_v19 = vpack.c.bf16 %v1466_v1, %v1462_v63 }
 0x20b   :  { %v748_v3 = vpack.c.bf16 %v1464_v0, %v1468_v2 }
 0x20c   :  { %1288 = vmatprep.mubr.bf16.mxu0 %v747_v19 }
 0x20d   :  { %1289 = vmatmul.mubr.bf16.gmra.mxu0 %v748_v3 }
 0x295   :  { %v1262_v5 = vpop.f32.mrf.mxu0 }
 0x296   :  { %v846_v6 = vadd.f32 %v1262_v5, %v1817_v4 }
 0x297   :  { %v837_v7 = vpop.f32.mrf.mxu0 }
 0x298   :  { %967 = vst.msk [vmem:[%s1986_s7 + $0x10] sm:$0xff] %vm964_vm1, %v846_v6  ;;  %v838_v8 = vadd.f32 %v1817_v4, %v837_v7 }
 0x299   :  { %v1263_v9 = vpop.f32.mrf.mxu0 }
 0x29a   :  { %965 = vst.msk [vmem:[%s1986_s7] sm:$0xff] %vm964_vm1, %v838_v8  ;;  %v849_v10 = vadd.f32 %v1263_v9, %v1817_v4 }
 0x29b   :  { %v840_v11 = vpop.f32.mrf.mxu0 }
 0x29c   :  { %968 = vst.msk [vmem:[%s1986_s7 + $0x18] sm:$0xff] %vm964_vm1, %v849_v10  ;;  %v841_v12 = vadd.f32 %v1817_v4, %v840_v11 }
 0x29d   :  { %v1266_v27 = vpop.f32.mrf.mxu0 }
 0x29e   :  { %966 = vst.msk [vmem:[%s1986_s7 + $0x8] sm:$0xff] %vm964_vm1, %v841_v12  ;;  %v862_v13 = vadd.f32 %v1266_v27, %v1817_v4 }
 0x29f   :  { %v853_v14 = vpop.f32.mrf.mxu0 }
 0x2a0   :  { %971 = vst.msk [vmem:[%s1986_s7 + $0x30] sm:$0xff] %vm964_vm1, %v862_v13  ;;  %v854_v15 = vadd.f32 %v1817_v4, %v853_v14 }
 0x2a1   :  { %v1267_v16 = vpop.f32.mrf.mxu0 }
 0x2a2   :  { %969 = vst.msk [vmem:[%s1986_s7 + $0x20] sm:$0xff] %vm964_vm1, %v854_v15  ;;  %v865_v17 = vadd.f32 %v1267_v16, %v1817_v4 }
 0x2a3   :  { %v856_v18 = vpop.f32.mrf.mxu0 }
 0x2a4   :  { %972 = vst.msk [vmem:[%s1986_s7 + $0x38] sm:$0xff] %vm964_vm1, %v865_v17  ;;  %v857_v20 = vadd.f32 %v1817_v4, %v856_v18 }
 0x2a5   :  { %v1270_v21 = vpop.f32.mrf.mxu0 }
 0x2a6   :  { %970 = vst.msk [vmem:[%s1986_s7 + $0x28] sm:$0xff] %vm964_vm1, %v857_v20  ;;  %v878_v22 = vadd.f32 %v1270_v21, %v1817_v4 }
 0x2a7   :  { %v869_v23 = vpop.f32.mrf.mxu0 }
 0x2a8   :  { %975 = vst.msk [vmem:[%s1986_s7 + $0x50] sm:$0xff] %vm964_vm1, %v878_v22  ;;  %v870_v24 = vadd.f32 %v1817_v4, %v869_v23 }
 0x2a9   :  { %v1271_v25 = vpop.f32.mrf.mxu0 }
 0x2aa   :  { %973 = vst.msk [vmem:[%s1986_s7 + $0x40] sm:$0xff] %vm964_vm1, %v870_v24  ;;  %v881_v26 = vadd.f32 %v1271_v25, %v1817_v4 }
 0x2ab   :  { %v872_v28 = vpop.f32.mrf.mxu0 }
 0x2ac   :  { %976 = vst.msk [vmem:[%s1986_s7 + $0x58] sm:$0xff] %vm964_vm1, %v881_v26  ;;  %v873_v29 = vadd.f32 %v1817_v4, %v872_v28 }
 0x2ad   :  { %v1274_v30 = vpop.f32.mrf.mxu0 }
 0x2ae   :  { %974 = vst.msk [vmem:[%s1986_s7 + $0x48] sm:$0xff] %vm964_vm1, %v873_v29  ;;  %v894_v31 = vadd.f32 %v1274_v30, %v1817_v4 }
 0x2af   :  { %v885_v32 = vpop.f32.mrf.mxu0 }
 0x2b0   :  { %979 = vst.msk [vmem:[%s1986_s7 + $0x70] sm:$0xff] %vm964_vm1, %v894_v31  ;;  %v886_v33 = vadd.f32 %v1817_v4, %v885_v32 }
 0x2b1   :  { %v1275_v34 = vpop.f32.mrf.mxu0 }
 0x2b2   :  { %977 = vst.msk [vmem:[%s1986_s7 + $0x60] sm:$0xff] %vm964_vm1, %v886_v33  ;;  %v897_v35 = vadd.f32 %v1275_v34, %v1817_v4 }
 0x2b3   :  { %v888_v36 = vpop.f32.mrf.mxu0 }
 0x2b4   :  { %980 = vst.msk [vmem:[%s1986_s7 + $0x78] sm:$0xff] %vm964_vm1, %v897_v35  ;;  %v889_v37 = vadd.f32 %v1817_v4, %v888_v36 }
 0x2b5   :  { %v1278_v38 = vpop.f32.mrf.mxu0 }
 0x2b6   :  { %978 = vst.msk [vmem:[%s1986_s7 + $0x68] sm:$0xff] %vm964_vm1, %v889_v37  ;;  %v910_v39 = vadd.f32 %v1278_v38, %v1817_v4 }
 0x2b7   :  { %v901_v40 = vpop.f32.mrf.mxu0 }
 0x2b8   :  { %983 = vst.msk [vmem:[%s1986_s7 + $0x90] sm:$0xff] %vm964_vm1, %v910_v39  ;;  %v902_v41 = vadd.f32 %v1817_v4, %v901_v40 }
 0x2b9   :  { %v1279_v42 = vpop.f32.mrf.mxu0 }
 0x2ba   :  { %981 = vst.msk [vmem:[%s1986_s7 + $0x80] sm:$0xff] %vm964_vm1, %v902_v41  ;;  %v913_v43 = vadd.f32 %v1279_v42, %v1817_v4 }
 0x2bb   :  { %v904_v44 = vpop.f32.mrf.mxu0 }
 0x2bc   :  { %984 = vst.msk [vmem:[%s1986_s7 + $0x98] sm:$0xff] %vm964_vm1, %v913_v43  ;;  %v905_v45 = vadd.f32 %v1817_v4, %v904_v44 }
 0x2bd   :  { %v1282_v46 = vpop.f32.mrf.mxu0 }
 0x2be   :  { %982 = vst.msk [vmem:[%s1986_s7 + $0x88] sm:$0xff] %vm964_vm1, %v905_v45  ;;  %v926_v47 = vadd.f32 %v1282_v46, %v1817_v4 }
 0x2bf   :  { %v917_v48 = vpop.f32.mrf.mxu0 }
 0x2c0   :  { %987 = vst.msk [vmem:[%s1986_s7 + $0xb0] sm:$0xff] %vm964_vm1, %v926_v47  ;;  %v918_v49 = vadd.f32 %v1817_v4, %v917_v48 }
 0x2c1   :  { %v1283_v50 = vpop.f32.mrf.mxu0 }
 0x2c2   :  { %985 = vst.msk [vmem:[%s1986_s7 + $0xa0] sm:$0xff] %vm964_vm1, %v918_v49  ;;  %v929_v51 = vadd.f32 %v1283_v50, %v1817_v4 }
 0x2c3   :  { %v920_v52 = vpop.f32.mrf.mxu0 }
 0x2c4   :  { %988 = vst.msk [vmem:[%s1986_s7 + $0xb8] sm:$0xff] %vm964_vm1, %v929_v51  ;;  %v921_v53 = vadd.f32 %v1817_v4, %v920_v52 }
 0x2c5   :  { %v1286_v54 = vpop.f32.mrf.mxu0 }
 0x2c6   :  { %986 = vst.msk [vmem:[%s1986_s7 + $0xa8] sm:$0xff] %vm964_vm1, %v921_v53  ;;  %v942_v55 = vadd.f32 %v1286_v54, %v1817_v4 }
 0x2c7   :  { %v933_v56 = vpop.f32.mrf.mxu0 }
 0x2c8   :  { %991 = vst.msk [vmem:[%s1986_s7 + $0xd0] sm:$0xff] %vm964_vm1, %v942_v55  ;;  %v934_v57 = vadd.f32 %v1817_v4, %v933_v56 }
 0x2c9   :  { %v1287_v58 = vpop.f32.mrf.mxu0 }
 0x2ca   :  { %989 = vst.msk [vmem:[%s1986_s7 + $0xc0] sm:$0xff] %vm964_vm1, %v934_v57  ;;  %v945_v59 = vadd.f32 %v1287_v58, %v1817_v4 }
 0x2cb   :  { %v936_v60 = vpop.f32.mrf.mxu0 }
 0x2cc   :  { %992 = vst.msk [vmem:[%s1986_s7 + $0xd8] sm:$0xff] %vm964_vm1, %v945_v59  ;;  %v937_v61 = vadd.f32 %v1817_v4, %v936_v60 }
 0x2cd   :  { %v1290_v62 = vpop.f32.mrf.mxu0 }
 0x2ce   :  { %990 = vst.msk [vmem:[%s1986_s7 + $0xc8] sm:$0xff] %vm964_vm1, %v937_v61  ;;  %v958_v63 = vadd.f32 %v1290_v62, %v1817_v4 }
 0x2cf   :  { %v949_v0 = vpop.f32.mrf.mxu0 }
 0x2d0   :  { %995 = vst.msk [vmem:[%s1986_s7 + $0xf0] sm:$0xff] %vm964_vm1, %v958_v63  ;;  %v950_v1 = vadd.f32 %v1817_v4, %v949_v0 }
 0x2d1   :  { %v1291_v2 = vpop.f32.mrf.mxu0 }
 0x2d2   :  { %993 = vst.msk [vmem:[%s1986_s7 + $0xe0] sm:$0xff] %vm964_vm1, %v950_v1  ;;  %v961_v19 = vadd.f32 %v1291_v2, %v1817_v4 }
 0x2d3   :  { %v952_v3 = vpop.f32.mrf.mxu0 }
 0x2d4   :  { %996 = vst.msk [vmem:[%s1986_s7 + $0xf8] sm:$0xff] %vm964_vm1, %v961_v19  ;;  %v953_v5 = vadd.f32 %v1817_v4, %v952_v3 }
 0x2d6   :  { %994 = vst.msk [vmem:[%s1986_s7 + $0xe8] sm:$0xff] %vm964_vm1, %v953_v5 }

</bundles_post_ra>
